<compile_context>
chip_gen: v5e
topology: v5e:2x2
jax: 0.10.0
libtpu: 0.0.40
codegen_flags: <defaults>
</compile_context>

<pallas_src>
import functools

import jax
import jax.numpy as jnp
from jax import lax
from jax.experimental import pallas as pl
from jax.experimental.pallas import tpu as pltpu


def _round_up(x, m):
    return ((x + m - 1) // m) * m


def _device_kind():
    try:
        return jax.devices()[0].device_kind.lower()
    except Exception:
        return ""


def _default_dtypes():
    """Returns (matmul operand dtype, activation/tanh dtype)."""
    kind = _device_kind()
    if "tpu" not in kind:
        return jnp.float32, jnp.float32  # non-TPU fallback (interpret/CPU)
    bf16_vpu = any(t in kind for t in ("v6", "v7", "7x"))
    # The MXU is bf16-native on every TPU generation -> bf16 operands always;
    # only v6e / v7x have a bf16 EUP/VPU, so tanh stays f32 on older chips.
    return jnp.bfloat16, (jnp.bfloat16 if bf16_vpu else jnp.float32)


def _num_tensorcores():
    kind = _device_kind()
    return 2 if ("v7" in kind or "7x" in kind) else 1


def _respinn_kernel(n_res, compute_dtype, act_dtype, x_ref, *refs):
    """Fused ResPINN forward over one batch tile.

    x_ref : (bt, in_pad)  batch-major input tile.
    refs  : w0 (h, in_pad), b0 (h, 1),
            [wh (n_res, h, h), bh (n_res, h, 1),]     # packed hidden layers
            wl (out_pad, h), bl (out_pad, 1),
            o_ref (out_pad, bt)                       # feature-major output
    Weights in compute_dtype, biases f32, matmuls accumulate f32, bias/residual
    adds in f32, tanh evaluated in act_dtype.
    """
    if n_res > 0:
        w0_ref, b0_ref, wh_ref, bh_ref, wl_ref, bl_ref, o_ref = refs
    else:
        w0_ref, b0_ref, wl_ref, bl_ref, o_ref = refs
        wh_ref = bh_ref = None

    def mm(w, a):
        return jnp.dot(w, a.astype(compute_dtype), preferred_element_type=jnp.float32)

    # Layer 0: tanh(W0 @ x^T + b0) -> (h, bt) feature-major.  The NT dot_general
    # contracts the shared in_features axis, so the batch-major input tile never
    # needs an explicit transpose (wrapper- or kernel-side).
    acc = lax.dot_general(
        w0_ref[...],
        x_ref[...].astype(compute_dtype),
        dimension_numbers=(((1,), (1,)), ((), ())),
        preferred_element_type=jnp.float32,
    )
    out = jnp.tanh((acc + b0_ref[...]).astype(act_dtype))

    # Hidden residual layers: tanh(Wi @ out + bi + out).
    # f32 accumulate + f32 bias/residual add, then one cast and a (bf16) tanh.
    for li in range(n_res):
        acc = mm(wh_ref[li], out)
        out = jnp.tanh((acc + bh_ref[li] + out).astype(act_dtype))

    # Last layer (no residual): tanh(WL @ out + bL), stored in f32.
    acc = mm(wl_ref[...], out)
    o_ref[...] = jnp.tanh(acc + bl_ref[...]).astype(o_ref.dtype)


def respinn_forward(x, weights, biases, *, batch_tile=None, compute_dtype=None, act_dtype=None):
    """Fused ResPINN forward.

    x:       (B, input_size) float32
    weights: list of (out_i, in_i) float32   (PyTorch nn.Linear layout)
    biases:  list of (out_i,)   float32
    """
    cd_default, ad_default = _default_dtypes()
    compute_dtype = jnp.dtype(cd_default if compute_dtype is None else compute_dtype)
    act_dtype = jnp.dtype(ad_default if act_dtype is None else act_dtype)

    B, in_features = x.shape
    n_layers = len(weights)
    assert n_layers >= 2 and len(biases) == n_layers
    dims = [in_features] + [int(w.shape[0]) for w in weights]
    for li, w in enumerate(weights):
        assert tuple(w.shape) == (dims[li + 1], dims[li]), "inconsistent layer shapes"
    hidden = dims[1:-1]
    # The residual add requires every hidden layer to have the same width.
    assert all(h == hidden[0] for h in hidden), "ResPINN residual layers need equal hidden widths"

    out_features = dims[-1]
    n_res = n_layers - 2

    # Feature padding: bf16 packs 16 rows per sublane group, f32 packs 8.
    fpad = 16 if (compute_dtype == jnp.bfloat16 or act_dtype == jnp.bfloat16) else 8
    in_pad = _round_up(in_features, fpad)
    h_pad = _round_up(hidden[0], fpad)
    out_pad = _round_up(out_features, fpad)

    # Batch tile: lane-dense multiple of 128.  Big tiles amortize per-grid-step
    # overhead; per-tile VMEM stays <1 MiB even at 2048.
    if batch_tile is None:
        batch_tile = 2048 if act_dtype == jnp.bfloat16 else 1024
    bt = max(128, _round_up(int(batch_tile), 128))
    b_ceil = _round_up(B, 128)
    bt = min(bt, b_ceil)
    n_tc = _num_tensorcores()
    if n_tc > 1 and B > 128:
        # Keep >= n_tc grid steps so ("parallel",) spreads the batch over both
        # TensorCores on v7x.
        bt = min(bt, max(128, _round_up(pl.cdiv(b_ceil, n_tc), 128)))
    b_pad = _round_up(B, bt)

    # Zero-padded, batch-major input in the matmul operand dtype.  Padding is
    # semantically inert: padded weight rows/cols and biases are zero, tanh(0)=0,
    # and padded batch rows are sliced off at the end.
    x_in = x.astype(compute_dtype)
    if (b_pad, in_pad) != (B, in_features):
        x_in = jnp.pad(x_in, ((0, b_pad - B), (0, in_pad - in_features)))

    def pad_w(w, rows, cols):
        wp = jnp.zeros((rows, cols), jnp.float32)
        wp = wp.at[: w.shape[0], : w.shape[1]].set(w.astype(jnp.float32))
        return wp.astype(compute_dtype)

    def pad_b(b, rows):
        return jnp.zeros((rows, 1), jnp.float32).at[: b.shape[0], 0].set(b.astype(jnp.float32))

    w0 = pad_w(weights[0], h_pad, in_pad)
    b0 = pad_b(biases[0], h_pad)
    wl = pad_w(weights[-1], out_pad, h_pad)
    bl = pad_b(biases[-1], out_pad)

    inputs = [x_in, w0, b0]
    in_specs = [
        pl.BlockSpec((bt, in_pad), lambda i: (i, 0)),
        pl.BlockSpec((h_pad, in_pad), lambda i: (0, 0)),
        pl.BlockSpec((h_pad, 1), lambda i: (0, 0)),
    ]
    if n_res > 0:
        # Pack all hidden layers: 2 grid-invariant inputs instead of 2*n_res.
        wh = jnp.stack([pad_w(weights[1 + li], h_pad, h_pad) for li in range(n_res)])
        bh = jnp.stack([pad_b(biases[1 + li], h_pad) for li in range(n_res)])
        inputs += [wh, bh]
        in_specs += [
            pl.BlockSpec((n_res, h_pad, h_pad), lambda i: (0, 0, 0)),
            pl.BlockSpec((n_res, h_pad, 1), lambda i: (0, 0, 0)),
        ]
    inputs += [wl, bl]
    in_specs += [
        pl.BlockSpec((out_pad, h_pad), lambda i: (0, 0)),
        pl.BlockSpec((out_pad, 1), lambda i: (0, 0)),
    ]

    kernel = functools.partial(_respinn_kernel, n_res, compute_dtype, act_dtype)

    out_fm = pl.pallas_call(
        kernel,
        out_shape=jax.ShapeDtypeStruct((out_pad, b_pad), jnp.float32),
        grid_spec=pl.GridSpec(
            grid=(b_pad // bt,),
            in_specs=in_specs,
            out_specs=pl.BlockSpec((out_pad, bt), lambda i: (0, i)),
        ),
        compiler_params=pltpu.CompilerParams(dimension_semantics=("parallel",)),
    )(*inputs)

    # Feature-major -> (B, out_features); the output slab is tiny.
    return out_fm[:out_features, :B].T.astype(x.dtype)


def init_respinn_params(key, input_size, output_size, n_hidden, hidden_width):
    """Deterministic synthetic parameters (PyTorch nn.Linear-like uniform init)."""
    layer_dims = [input_size] + n_hidden * [hidden_width] + [output_size]
    weights, biases = [], []
    for din, dout in zip(layer_dims, layer_dims[1:]):
        key, kw, kb = jax.random.split(key, 3)
        bound = 1.0 / (din ** 0.5)
        weights.append(jax.random.uniform(kw, (dout, din), jnp.float32, -bound, bound))
        biases.append(jax.random.uniform(kb, (dout,), jnp.float32, -bound, bound))
    return weights, biases


def respinn_reference(x, weights, biases):
    """Pure-JAX reference matching the PyTorch forward semantics."""
    out = jnp.tanh(x @ weights[0].T + biases[0])
    for w, b in zip(weights[1:-1], biases[1:-1]):
        out = jnp.tanh(out @ w.T + b + out)
    return jnp.tanh(out @ weights[-1].T + biases[-1])


if __name__ == "__main__":
    # Small, module-consistent shapes.
    batch = 16
    input_size = 4
    output_size = 2
    n_hidden = 5
    hidden_width = 32

    key = jax.random.PRNGKey(0)
    key, kx = jax.random.split(key)
    x = jax.random.normal(kx, (batch, input_size), jnp.float32)
    weights, biases = init_respinn_params(key, input_size, output_size, n_hidden, hidden_width)

    ref = respinn_reference(x, weights, biases)

    # 1) Full-f32 kernel path: must match the PyTorch-style reference tightly.
    out_f32 = jax.block_until_ready(
        respinn_forward(x, weights, biases, compute_dtype=jnp.float32, act_dtype=jnp.float32)
    )
    assert out_f32.shape == (batch, output_size)
    err_f32 = float(jnp.max(jnp.abs(out_f32 - ref)))
    assert jnp.allclose(out_f32, ref, atol=1e-5, rtol=1e-5), f"f32 max abs err {err_f32}"

    # 2) Default (performance) path: bf16 MXU operands, bf16 tanh on v6e/v7x.
    out_fast = jax.block_until_ready(respinn_forward(x, weights, biases))
    assert out_fast.shape == (batch, output_size)
    cd, ad = _default_dtypes()
    tol = 1e-5 if (jnp.dtype(cd) == jnp.dtype(jnp.float32)
                   and jnp.dtype(ad) == jnp.dtype(jnp.float32)) else 1e-1
    err_fast = float(jnp.max(jnp.abs(out_fast - ref)))
    assert jnp.allclose(out_fast, ref, atol=tol, rtol=tol), f"fast max abs err {err_fast}"

    print("KERNEL_OK")
</pallas_src>

<mosaic_0001>
module attributes {stable_mosaic.version = 11 : i64} {
  func.func @_respinn_kernel(%arg0: i32, %arg1: memref<128x8xf32, #tpu.memory_space<vmem>>, %arg2: memref<32x8xf32, #tpu.memory_space<vmem>>, %arg3: memref<32x1xf32, #tpu.memory_space<vmem>>, %arg4: memref<4x32x32xf32, #tpu.memory_space<vmem>>, %arg5: memref<4x32x1xf32, #tpu.memory_space<vmem>>, %arg6: memref<8x32xf32, #tpu.memory_space<vmem>>, %arg7: memref<8x1xf32, #tpu.memory_space<vmem>>, %arg8: memref<8x128xf32, #tpu.memory_space<vmem>>) attributes {dimension_semantics = [#tpu.dimension_semantics<parallel>], iteration_bounds = array<i64: 1>, scalar_prefetch = 0 : i64, scratch_operands = 0 : i64, tpu.core_type = #tpu.core_type<tc>, window_params = [{transform_indices = @transform_0, window_bounds = array<i64: 128, 8>}, {pipeline_mode = #tpu.pipeline_mode<synchronous>, transform_indices = @transform_1, window_bounds = array<i64: 32, 8>}, {pipeline_mode = #tpu.pipeline_mode<synchronous>, transform_indices = @transform_2, window_bounds = array<i64: 32, 1>}, {pipeline_mode = #tpu.pipeline_mode<synchronous>, transform_indices = @transform_3, window_bounds = array<i64: 4, 32, 32>}, {pipeline_mode = #tpu.pipeline_mode<synchronous>, transform_indices = @transform_4, window_bounds = array<i64: 4, 32, 1>}, {pipeline_mode = #tpu.pipeline_mode<synchronous>, transform_indices = @transform_5, window_bounds = array<i64: 8, 32>}, {pipeline_mode = #tpu.pipeline_mode<synchronous>, transform_indices = @transform_6, window_bounds = array<i64: 8, 1>}, {transform_indices = @transform_7, window_bounds = array<i64: 8, 128>}]} {
    %c0 = arith.constant 0 : index
    %c0_0 = arith.constant 0 : index
    %0 = vector.load %arg2[%c0, %c0_0] : memref<32x8xf32, #tpu.memory_space<vmem>>, vector<32x8xf32>
    %c0_1 = arith.constant 0 : index
    %c0_2 = arith.constant 0 : index
    %1 = vector.load %arg1[%c0_1, %c0_2] : memref<128x8xf32, #tpu.memory_space<vmem>>, vector<128x8xf32>
    %cst = arith.constant dense<0.000000e+00> : vector<32x128xf32>
    %2 = tpu.matmul %0, %1, %cst {dimension_numbers = #tpu.dot_dimension_numbers<[1], [1], [0], [0], [0, 0, 1, 0], [], []>} : vector<32x8xf32>, vector<128x8xf32>, vector<32x128xf32> -> vector<32x128xf32>
    %c0_3 = arith.constant 0 : index
    %c0_4 = arith.constant 0 : index
    %3 = vector.load %arg3[%c0_3, %c0_4] : memref<32x1xf32, #tpu.memory_space<vmem>>, vector<32x1xf32>
    %4 = vector.broadcast %3 : vector<32x1xf32> to vector<32x128xf32>
    %5 = arith.addf %2, %4 : vector<32x128xf32>
    %6 = math.tanh %5 : vector<32x128xf32>
    %c0_5 = arith.constant 0 : index
    %c0_6 = arith.constant 0 : index
    %c0_7 = arith.constant 0 : index
    %7 = vector.load %arg4[%c0_5, %c0_6, %c0_7] : memref<4x32x32xf32, #tpu.memory_space<vmem>>, vector<1x32x32xf32>
    %8 = vector.shape_cast %7 : vector<1x32x32xf32> to vector<32x32xf32>
    %cst_8 = arith.constant dense<0.000000e+00> : vector<32x128xf32>
    %9 = tpu.matmul %8, %6, %cst_8 {dimension_numbers = #tpu.dot_dimension_numbers<[1], [0], [0], [1], [0, 0, 1, 1], [], []>} : vector<32x32xf32>, vector<32x128xf32>, vector<32x128xf32> -> vector<32x128xf32>
    %c0_9 = arith.constant 0 : index
    %c0_10 = arith.constant 0 : index
    %c0_11 = arith.constant 0 : index
    %10 = vector.load %arg5[%c0_9, %c0_10, %c0_11] : memref<4x32x1xf32, #tpu.memory_space<vmem>>, vector<1x32x1xf32>
    %11 = vector.shape_cast %10 : vector<1x32x1xf32> to vector<32x1xf32>
    %12 = vector.broadcast %11 : vector<32x1xf32> to vector<32x128xf32>
    %13 = arith.addf %9, %12 : vector<32x128xf32>
    %14 = arith.addf %13, %6 : vector<32x128xf32>
    %15 = math.tanh %14 : vector<32x128xf32>
    %c1 = arith.constant 1 : index
    %c0_12 = arith.constant 0 : index
    %c0_13 = arith.constant 0 : index
    %16 = vector.load %arg4[%c1, %c0_12, %c0_13] : memref<4x32x32xf32, #tpu.memory_space<vmem>>, vector<1x32x32xf32>
    %17 = vector.shape_cast %16 : vector<1x32x32xf32> to vector<32x32xf32>
    %cst_14 = arith.constant dense<0.000000e+00> : vector<32x128xf32>
    %18 = tpu.matmul %17, %15, %cst_14 {dimension_numbers = #tpu.dot_dimension_numbers<[1], [0], [0], [1], [0, 0, 1, 1], [], []>} : vector<32x32xf32>, vector<32x128xf32>, vector<32x128xf32> -> vector<32x128xf32>
    %c1_15 = arith.constant 1 : index
    %c0_16 = arith.constant 0 : index
    %c0_17 = arith.constant 0 : index
    %19 = vector.load %arg5[%c1_15, %c0_16, %c0_17] : memref<4x32x1xf32, #tpu.memory_space<vmem>>, vector<1x32x1xf32>
    %20 = vector.shape_cast %19 : vector<1x32x1xf32> to vector<32x1xf32>
    %21 = vector.broadcast %20 : vector<32x1xf32> to vector<32x128xf32>
    %22 = arith.addf %18, %21 : vector<32x128xf32>
    %23 = arith.addf %22, %15 : vector<32x128xf32>
    %24 = math.tanh %23 : vector<32x128xf32>
    %c2 = arith.constant 2 : index
    %c0_18 = arith.constant 0 : index
    %c0_19 = arith.constant 0 : index
    %25 = vector.load %arg4[%c2, %c0_18, %c0_19] : memref<4x32x32xf32, #tpu.memory_space<vmem>>, vector<1x32x32xf32>
    %26 = vector.shape_cast %25 : vector<1x32x32xf32> to vector<32x32xf32>
    %cst_20 = arith.constant dense<0.000000e+00> : vector<32x128xf32>
    %27 = tpu.matmul %26, %24, %cst_20 {dimension_numbers = #tpu.dot_dimension_numbers<[1], [0], [0], [1], [0, 0, 1, 1], [], []>} : vector<32x32xf32>, vector<32x128xf32>, vector<32x128xf32> -> vector<32x128xf32>
    %c2_21 = arith.constant 2 : index
    %c0_22 = arith.constant 0 : index
    %c0_23 = arith.constant 0 : index
    %28 = vector.load %arg5[%c2_21, %c0_22, %c0_23] : memref<4x32x1xf32, #tpu.memory_space<vmem>>, vector<1x32x1xf32>
    %29 = vector.shape_cast %28 : vector<1x32x1xf32> to vector<32x1xf32>
    %30 = vector.broadcast %29 : vector<32x1xf32> to vector<32x128xf32>
    %31 = arith.addf %27, %30 : vector<32x128xf32>
    %32 = arith.addf %31, %24 : vector<32x128xf32>
    %33 = math.tanh %32 : vector<32x128xf32>
    %c3 = arith.constant 3 : index
    %c0_24 = arith.constant 0 : index
    %c0_25 = arith.constant 0 : index
    %34 = vector.load %arg4[%c3, %c0_24, %c0_25] : memref<4x32x32xf32, #tpu.memory_space<vmem>>, vector<1x32x32xf32>
    %35 = vector.shape_cast %34 : vector<1x32x32xf32> to vector<32x32xf32>
    %cst_26 = arith.constant dense<0.000000e+00> : vector<32x128xf32>
    %36 = tpu.matmul %35, %33, %cst_26 {dimension_numbers = #tpu.dot_dimension_numbers<[1], [0], [0], [1], [0, 0, 1, 1], [], []>} : vector<32x32xf32>, vector<32x128xf32>, vector<32x128xf32> -> vector<32x128xf32>
    %c3_27 = arith.constant 3 : index
    %c0_28 = arith.constant 0 : index
    %c0_29 = arith.constant 0 : index
    %37 = vector.load %arg5[%c3_27, %c0_28, %c0_29] : memref<4x32x1xf32, #tpu.memory_space<vmem>>, vector<1x32x1xf32>
    %38 = vector.shape_cast %37 : vector<1x32x1xf32> to vector<32x1xf32>
    %39 = vector.broadcast %38 : vector<32x1xf32> to vector<32x128xf32>
    %40 = arith.addf %36, %39 : vector<32x128xf32>
    %41 = arith.addf %40, %33 : vector<32x128xf32>
    %42 = math.tanh %41 : vector<32x128xf32>
    %c0_30 = arith.constant 0 : index
    %c0_31 = arith.constant 0 : index
    %43 = vector.load %arg6[%c0_30, %c0_31] : memref<8x32xf32, #tpu.memory_space<vmem>>, vector<8x32xf32>
    %cst_32 = arith.constant dense<0.000000e+00> : vector<8x128xf32>
    %44 = tpu.matmul %43, %42, %cst_32 {dimension_numbers = #tpu.dot_dimension_numbers<[1], [0], [0], [1], [0, 0, 1, 1], [], []>} : vector<8x32xf32>, vector<32x128xf32>, vector<8x128xf32> -> vector<8x128xf32>
    %c0_33 = arith.constant 0 : index
    %c0_34 = arith.constant 0 : index
    %45 = vector.load %arg7[%c0_33, %c0_34] : memref<8x1xf32, #tpu.memory_space<vmem>>, vector<8x1xf32>
    %46 = vector.broadcast %45 : vector<8x1xf32> to vector<8x128xf32>
    %47 = arith.addf %44, %46 : vector<8x128xf32>
    %48 = math.tanh %47 : vector<8x128xf32>
    %c0_35 = arith.constant 0 : index
    %c0_36 = arith.constant 0 : index
    %49 = vector.load %arg8[%c0_35, %c0_36] : memref<8x128xf32, #tpu.memory_space<vmem>>, vector<8x128xf32>
    tpu.vector_store %arg8[%c0_35, %c0_36], %48 {strides = array<i32>} : memref<8x128xf32, #tpu.memory_space<vmem>>, vector<8x128xf32>,
    return
  }
  func.func @transform_0(%arg0: i32) -> (i32, i32) {
    %c0_i32 = arith.constant 0 : i32
    %c0_i32_0 = arith.constant 0 : i32
    return %arg0, %c0_i32 : i32, i32
  }
  func.func @transform_1(%arg0: i32) -> (i32, i32) {
    %c0_i32 = arith.constant 0 : i32
    %c0_i32_0 = arith.constant 0 : i32
    %c0_i32_1 = arith.constant 0 : i32
    return %c0_i32, %c0_i32_0 : i32, i32
  }
  func.func @transform_2(%arg0: i32) -> (i32, i32) {
    %c0_i32 = arith.constant 0 : i32
    %c0_i32_0 = arith.constant 0 : i32
    %c0_i32_1 = arith.constant 0 : i32
    return %c0_i32, %c0_i32_0 : i32, i32
  }
  func.func @transform_3(%arg0: i32) -> (i32, i32, i32) {
    %c0_i32 = arith.constant 0 : i32
    %c0_i32_0 = arith.constant 0 : i32
    %c0_i32_1 = arith.constant 0 : i32
    %c0_i32_2 = arith.constant 0 : i32
    return %c0_i32, %c0_i32_0, %c0_i32_1 : i32, i32, i32
  }
  func.func @transform_4(%arg0: i32) -> (i32, i32, i32) {
    %c0_i32 = arith.constant 0 : i32
    %c0_i32_0 = arith.constant 0 : i32
    %c0_i32_1 = arith.constant 0 : i32
    %c0_i32_2 = arith.constant 0 : i32
    return %c0_i32, %c0_i32_0, %c0_i32_1 : i32, i32, i32
  }
  func.func @transform_5(%arg0: i32) -> (i32, i32) {
    %c0_i32 = arith.constant 0 : i32
    %c0_i32_0 = arith.constant 0 : i32
    %c0_i32_1 = arith.constant 0 : i32
    return %c0_i32, %c0_i32_0 : i32, i32
  }
  func.func @transform_6(%arg0: i32) -> (i32, i32) {
    %c0_i32 = arith.constant 0 : i32
    %c0_i32_0 = arith.constant 0 : i32
    %c0_i32_1 = arith.constant 0 : i32
    return %c0_i32, %c0_i32_0 : i32, i32
  }
  func.func @transform_7(%arg0: i32) -> (i32, i32) {
    %c0_i32 = arith.constant 0 : i32
    %c0_i32_0 = arith.constant 0 : i32
    return %c0_i32, %arg0 : i32, i32
  }
}

</mosaic_0001>

<bundles_post_ra>
// kernel: tpu_custom_call.1
= control target key start
LH: loop header
LB: loop body
LE: loop exit
PB: predicated region body
PF: predicated region fallthrough
CT: control target
= control target key end

     0   :  { %vm71_vm0 = vcmask 64512   ;;  %s918_s0 = inlined_call_operand.vmem [shape: f32[128,8], index: 0, kind: input, shape index: {}]   ;;  %s919_s1 = inlined_call_operand.vmem [shape: f32[32,8], index: 1, kind: input, shape index: {}]   ;;  %s920_s2 = inlined_call_operand.vmem [shape: f32[32,1], index: 2, kind: input, shape index: {}]   ;;  %s921_s3 = inlined_call_operand.vmem [shape: f32[4,32,32], index: 3, kind: input, shape index: {}]   ;;  %s922_s4 = inlined_call_operand.vmem [shape: f32[4,32,1], index: 4, kind: input, shape index: {}]   ;;  %s923_s5 = inlined_call_operand.vmem [shape: f32[8,32], index: 5, kind: input, shape index: {}]   ;;  %s924_s6 = inlined_call_operand.vmem [shape: f32[8,1], index: 6, kind: input, shape index: {}]   ;;  %s925_s7 = inlined_call_operand.hbm [shape: f32[8,128], index: 7, kind: output, shape index: {}]  }
   0x1   :  { %v46_v0 = vld [vmem:[%s918_s0 + $0x78] sm:$0xff]  ;;  %v45_v1 = vld [vmem:[%s918_s0 + $0x70] sm:$0xff] }
   0x2   :  { %528 = vmatpush.xpose.msk.msra.mxu0 %vm71_vm0, %v46_v0 }
   0x3   :  { %12 = vsyncpa [#allocation3], 0  ;;  %v44_v2 = vld [vmem:[%s918_s0 + $0x68] sm:$0xff]  ;;  %v50_v3 = vld [vmem:[%s920_s2 + $0x18] sm:$0xff]  ;;  %v662_v5 = vmov 0   ;;  %vm193_vm1 = vcmask 261120  }
   0x4   :  { %v43_v4 = vld [vmem:[%s918_s0 + $0x60] sm:$0xff]  ;;  %591 = vset.pattern.permute.xlu0 %v662_v5  ;;  %592 = vset.pattern.permute.xlu1 %v662_v5  ;;  %v48_v6 = vld [vmem:[%s920_s2 + $0x8] sm:$0xff]  ;;  %v42_v7 = vld [vmem:[%s918_s0 + $0x58] sm:$0xff]  ;;  %s663_s14 = smov [#allocation2]  }
   0x5   :  { %68 = vperm.xlu0 %591, %v50_v3   ;;  %593 = vset.pattern.permute.xlu2 %v662_v5  ;;  %v49_v8 = vld [vmem:[%s920_s2 + $0x10] sm:$0xff]  ;;  %v47_v10 = vld [vmem:[%s920_s2] sm:$0xff]  ;;  %v40_v11 = vld [vmem:[%s918_s0 + $0x48] sm:$0xff]  ;;  %s517_s15 = sshll.u32 %s663_s14, 4  ;;  %s518_s15 = int_to_ptr.vmem [resolvable:$true] %s517_s15 }
   0x6   :  { %529 = vmatpush.xpose.msk.msra.mxu0 %vm71_vm0, %v45_v1  ;;  %58 = vperm.xlu1 %592, %v48_v6   ;;  %v41_v9 = vld [vmem:[%s918_s0 + $0x50] sm:$0xff]  ;;  %v170_v12 = vld [vmem:[%s922_s4 + $0x8] sm:$0xff]  ;;  %v39_v13 = vld [vmem:[%s918_s0 + $0x40] sm:$0xff] }
   0x7   :  { %v38_v14 = vld [vmem:[%s918_s0 + $0x38] sm:$0xff]  ;;  %v169_v15 = vld [vmem:[%s922_s4] sm:$0xff]  ;;  %v558_v16 = vld [vmem:[%s922_s4 + $0x30] sm:$0xff] }
   0x8   :  { %v37_v17 = vld [vmem:[%s918_s0 + $0x30] sm:$0xff]  ;;  %v36_v18 = vld [vmem:[%s918_s0 + $0x28] sm:$0xff]  ;;  %v571_v20 = vld [vmem:[%s922_s4 + $0x58] sm:$0xff] }
   0x9   :  { %v557_v19 = vld [vmem:[%s922_s4 + $0x28] sm:$0xff]  ;;  %v35_v21 = vld [vmem:[%s918_s0 + $0x20] sm:$0xff]  ;;  %v34_v22 = vld [vmem:[%s918_s0 + $0x18] sm:$0xff] }
   0xa   :  { %530 = vmatpush.xpose.msk.msra.mxu0 %vm71_vm0, %v44_v2  ;;  %v570_v23 = vld [vmem:[%s922_s4 + $0x50] sm:$0xff]  ;;  %v568_v24 = vld [vmem:[%s922_s4 + $0x40] sm:$0xff]  ;;  %v32_v26 = vld [vmem:[%s918_s0 + $0x8] sm:$0xff] }
   0xb   :  { %v33_v25 = vld [vmem:[%s918_s0 + $0x10] sm:$0xff]  ;;  %v583_v27 = vld [vmem:[%s922_s4 + $0x78] sm:$0xff]  ;;  %v581_v28 = vld [vmem:[%s922_s4 + $0x68] sm:$0xff] }
   0xc   :  { %v31_v29 = vld [vmem:[%s918_s0] sm:$0xff]  ;;  %v28_v32 = vld [vmem:[%s919_s1 + $0x8] sm:$0xff]  ;;  %v29_v33 = vld [vmem:[%s919_s1 + $0x10] sm:$0xff] }
   0xd   :  { %63 = vperm.xlu0 %591, %v49_v8   ;;  %v27_v30 = vld [vmem:[%s919_s1] sm:$0xff]  ;;  %v30_v34 = vld [vmem:[%s919_s1 + $0x18] sm:$0xff]  ;;  %v171_v40 = vld [vmem:[%s922_s4 + $0x10] sm:$0xff] }
   0xe   :  { %531 = vmatpush.xpose.msk.msra.mxu0 %vm71_vm0, %v43_v4  ;;  %53 = vperm.xlu1 %592, %v47_v10   ;;  %v580_v31 = vld [vmem:[%s922_s4 + $0x60] sm:$0xff]  ;;  %v172_v37 = vld [vmem:[%s922_s4 + $0x18] sm:$0xff]  ;;  %v569_v56 = vld [vmem:[%s922_s4 + $0x48] sm:$0xff] }
   0xf   :  { %190 = vperm.xlu2 %593, %v172_v37   ;;  %v559_v46 = vld [vmem:[%s922_s4 + $0x38] sm:$0xff]  ;;  %v556_v51 = vld [vmem:[%s922_s4 + $0x20] sm:$0xff]  ;;  %v166_v57 = vld [vmem:[%s921_s3 + $0x8] sm:$0xff] }
  0x10   :  { %v165_v54 = vld [vmem:[%s921_s3] sm:$0xff]  ;;  %v582_v58 = vld [vmem:[%s922_s4 + $0x70] sm:$0xff]  ;;  %v168_v61 = vld [vmem:[%s921_s3 + $0x18] sm:$0xff] }
  0x11   :  { %v167_v59 = vld [vmem:[%s921_s3 + $0x10] sm:$0xff]  ;;  %v481_v60 = vld [vmem:[%s924_s6] sm:$0xff]  ;;  %s519_s6 = sshll.u32 %s925_s7, 4  ;;  %s520_s6 = int_to_ptr.hbm [resolvable:$true] %s519_s6 }
  0x12   :  { %532 = vmatpush.xpose.msk.msra.mxu0 %vm71_vm0, %v42_v7 }
  0x15   :  { %180 = vperm.xlu0 %591, %v170_v12  }
  0x16   :  { %533 = vmatpush.xpose.msk.msra.mxu0 %vm71_vm0, %v41_v9  ;;  %175 = vperm.xlu1 %592, %v169_v15  }
  0x17   :  { %185 = vperm.xlu2 %593, %v171_v40  }
  0x1a   :  { %534 = vmatpush.xpose.msk.msra.mxu0 %vm71_vm0, %v40_v11 }
  0x1d   :  { %265 = vperm.xlu0 %591, %v558_v16  }
  0x1e   :  { %535 = vmatpush.xpose.msk.msra.mxu0 %vm71_vm0, %v39_v13  ;;  %260 = vperm.xlu1 %592, %v557_v19   ;;  %v553_v19 = vld [vmem:[%s921_s3 + $0x28] sm:$0xff] }
  0x1f   :  { %270 = vperm.xlu2 %593, %v559_v46  }
  0x22   :  { %536 = vmatpush.xpose.msk.msra.mxu0 %vm71_vm0, %v38_v14 }
  0x25   :  { %349 = vperm.xlu0 %591, %v571_v20   ;;  %v554_v20 = vld [vmem:[%s921_s3 + $0x30] sm:$0xff] }
  0x26   :  { %537 = vmatpush.xpose.msk.msra.mxu0 %vm71_vm0, %v37_v17  ;;  %344 = vperm.xlu1 %592, %v570_v23   ;;  %v552_v17 = vld [vmem:[%s921_s3 + $0x20] sm:$0xff] }
  0x27   :  { %255 = vperm.xlu2 %593, %v556_v51  }
  0x2a   :  { %538 = vmatpush.xpose.msk.msra.mxu0 %vm71_vm0, %v36_v18 }
  0x2d   :  { %334 = vperm.xlu0 %591, %v568_v24  }
  0x2e   :  { %539 = vmatpush.xpose.msk.msra.mxu0 %vm71_vm0, %v35_v21  ;;  %428 = vperm.xlu1 %592, %v583_v27   ;;  %v555_v21 = vld [vmem:[%s921_s3 + $0x38] sm:$0xff] }
  0x2f   :  { %339 = vperm.xlu2 %593, %v569_v56  }
  0x32   :  { %540 = vmatpush.xpose.msk.msra.mxu0 %vm71_vm0, %v34_v22 }
  0x35   :  { %418 = vperm.xlu0 %591, %v581_v28  }
  0x36   :  { %541 = vmatpush.xpose.msk.msra.mxu0 %vm71_vm0, %v33_v25  ;;  %413 = vperm.xlu1 %592, %v580_v31  }
  0x37   :  { %423 = vperm.xlu2 %593, %v582_v58  }
  0x3a   :  { %542 = vmatpush.xpose.msk.msra.mxu0 %vm71_vm0, %v32_v26 }
  0x3e   :  { %543 = vmatpush.xpose.msk.msra.mxu0 %vm71_vm0, %v31_v29 }
  0x3f   :  { %484 = vperm.xlu2 %593, %v481_v60  }
  0x41   :  { %544 = vmatmul.msk.f32.vlgmr.msra.gmra.mxu0 %vm71_vm0, %v27_v30 }
  0x49   :  { %545 = vmatmul.msk.f32.gmra.mxu0 %vm71_vm0, %v28_v32 }
  0x51   :  { %546 = vmatmul.msk.f32.gmra.mxu0 %vm71_vm0, %v29_v33 }
  0x59   :  { %547 = vmatmul.msk.f32.gmra.mxu0 %vm71_vm0, %v30_v34 }
  0x69   :  { %v191_v0 = vpop.permute.xlu2 %190 }
  0x71   :  { %v186_v2 = vpop.permute.xlu2 %185 }
  0x77   :  { %v69_v38 = vpop.permute.xlu0 %68 }
  0x78   :  { %v59_v41 = vpop.permute.xlu1 %58 }
  0x79   :  { %v271_v24 = vpop.permute.xlu2 %270 }
  0x7f   :  { %v64_v42 = vpop.permute.xlu0 %63 }
  0x80   :  { %v54_v48 = vpop.permute.xlu1 %53 }
  0x81   :  { %v256_v32 = vpop.permute.xlu2 %255 }
  0x87   :  { %v181_v4 = vpop.permute.xlu0 %180 }
  0x88   :  { %v176_v8 = vpop.permute.xlu1 %175 }
  0x8f   :  { %v266_v26 = vpop.permute.xlu0 %265 }
  0x90   :  { %v261_v28 = vpop.permute.xlu1 %260 }
  0xbe   :  { %v149_v35 = vpop.f32.mrf.mxu0 }
  0xbf   :  { %v150_v49 = vadd.f32 %v149_v35, %v54_v48  ;;  %v350_v48 = vpop.permute.xlu0 %349 }
  0xc6   :  { %v152_v36 = vpop.f32.mrf.mxu0 }
  0xc7   :  { %v153_v47 = vadd.f32 %v152_v36, %v59_v41  ;;  %v564_v41 = vld [vmem:[%s921_s3 + $0x40] sm:$0xff]  ;;  %v335_v56 = vpop.permute.xlu0 %334 }
  0xce   :  { %v155_v39 = vpop.f32.mrf.mxu0 }
  0xcf   :  { %v156_v44 = vadd.f32 %v155_v39, %v64_v42 }
  0xd6   :  { %v158_v43 = vpop.f32.mrf.mxu0 }
  0xd7   :  { %v159_v45 = vadd.f32 %v158_v43, %v69_v38  ;;  %v565_v43 = vld [vmem:[%s921_s3 + $0x48] sm:$0xff] }
  0xd9   :  { %594 = vtanh.f32 %v159_v45  ;;  %v567_v45 = vld [vmem:[%s921_s3 + $0x58] sm:$0xff] }
  0xda   :  { %596 = vtanh.f32 %v156_v44  ;;  %v566_v44 = vld [vmem:[%s921_s3 + $0x50] sm:$0xff] }
  0xdb   :  { %598 = vtanh.f32 %v153_v47 }
  0xdc   :  { %600 = vtanh.f32 %v150_v49 }
  0xdf   :  { %v595_v50 = vpop.eup %594 }
  0xe0   :  { %218 = vmatpush.msra.mxu1 %v595_v50  ;;  %v597_v52 = vpop.eup %596 }
  0xe1   :  { %v599_v53 = vpop.eup %598 }
  0xe2   :  { %219 = vmatpush.msra.mxu1 %v597_v52  ;;  %v601_v55 = vpop.eup %600 }
  0xe4   :  { %220 = vmatpush.msra.mxu1 %v599_v53 }
  0xe6   :  { %221 = vmatpush.msra.mxu1 %v601_v55 }
  0xe7   :  { %548 = vmatmul.msk.f32.vlgmr.msra.gmra.mxu1 %vm193_vm1, %v165_v54 }
  0xef   :  { %549 = vmatmul.msk.f32.gmra.mxu1 %vm193_vm1, %v166_v57 }
  0xf7   :  { %550 = vmatmul.msk.f32.gmra.mxu1 %vm193_vm1, %v167_v59 }
  0xff   :  { %551 = vmatmul.msk.f32.gmra.mxu1 %vm193_vm1, %v168_v61 }
 0x164   :  { %v223_v62 = vpop.f32.mrf.mxu1 }
 0x165   :  { %v224_v9 = vadd.f32 %v223_v62, %v176_v8 }
 0x167   :  { %v235_v13 = vadd.f32 %v601_v55, %v224_v9 }
 0x16c   :  { %v226_v63 = vpop.f32.mrf.mxu1 }
 0x16d   :  { %v227_v6 = vadd.f32 %v226_v63, %v181_v4  ;;  %v578_v4 = vld [vmem:[%s921_s3 + $0x70] sm:$0xff] }
 0x16f   :  { %v236_v12 = vadd.f32 %v599_v53, %v227_v6 }
 0x174   :  { %v229_v1 = vpop.f32.mrf.mxu1 }
 0x175   :  { %v230_v3 = vadd.f32 %v229_v1, %v186_v2  ;;  %v576_v1 = vld [vmem:[%s921_s3 + $0x60] sm:$0xff] }
 0x177   :  { %v237_v10 = vadd.f32 %v597_v52, %v230_v3  ;;  %v340_v52 = vpop.permute.xlu2 %339  ;;  %v577_v3 = vld [vmem:[%s921_s3 + $0x68] sm:$0xff] }
 0x17c   :  { %v232_v5 = vpop.f32.mrf.mxu1 }
 0x17d   :  { %v233_v7 = vadd.f32 %v232_v5, %v191_v0  ;;  %v579_v5 = vld [vmem:[%s921_s3 + $0x78] sm:$0xff] }
 0x17f   :  { %v238_v11 = vadd.f32 %v595_v50, %v233_v7  ;;  %v345_v50 = vpop.permute.xlu1 %344 }
 0x181   :  { %602 = vtanh.f32 %v238_v11 }
 0x182   :  { %604 = vtanh.f32 %v237_v10  ;;  %v424_v10 = vpop.permute.xlu2 %423 }
 0x183   :  { %606 = vtanh.f32 %v236_v12  ;;  %v419_v12 = vpop.permute.xlu0 %418 }
 0x184   :  { %608 = vtanh.f32 %v235_v13 }
 0x187   :  { %v603_v14 = vpop.eup %602  ;;  %v429_v8 = vpop.permute.xlu1 %428 }
 0x188   :  { %297 = vmatpush.msra.mxu2 %v603_v14  ;;  %v605_v15 = vpop.eup %604 }
 0x189   :  { %v607_v16 = vpop.eup %606 }
 0x18a   :  { %298 = vmatpush.msra.mxu2 %v605_v15  ;;  %v609_v18 = vpop.eup %608 }
 0x18c   :  { %299 = vmatpush.msra.mxu2 %v607_v16 }
 0x18e   :  { %300 = vmatpush.msra.mxu2 %v609_v18 }
 0x18f   :  { %560 = vmatmul.msk.f32.vlgmr.msra.gmra.mxu2 %vm193_vm1, %v552_v17 }
 0x197   :  { %561 = vmatmul.msk.f32.gmra.mxu2 %vm193_vm1, %v553_v19 }
 0x19f   :  { %562 = vmatmul.msk.f32.gmra.mxu2 %vm193_vm1, %v554_v20 }
 0x1a7   :  { %563 = vmatmul.msk.f32.gmra.mxu2 %vm193_vm1, %v555_v21 }
 0x212   :  { %v302_v22 = vpop.f32.mrf.mxu2 }
 0x213   :  { %v303_v33 = vadd.f32 %v302_v22, %v256_v32 }
 0x215   :  { %v314_v37 = vadd.f32 %v609_v18, %v303_v33 }
 0x21a   :  { %v305_v23 = vpop.f32.mrf.mxu2 }
 0x21b   :  { %v306_v30 = vadd.f32 %v305_v23, %v261_v28 }
 0x21d   :  { %v315_v36 = vadd.f32 %v607_v16, %v306_v30  ;;  %v414_v16 = vpop.permute.xlu1 %413 }
 0x222   :  { %v308_v25 = vpop.f32.mrf.mxu2 }
 0x223   :  { %v309_v27 = vadd.f32 %v308_v25, %v266_v26  ;;  %v480_v25 = vld [vmem:[%s923_s5] sm:$0xff] }
 0x225   :  { %v316_v34 = vadd.f32 %v605_v15, %v309_v27  ;;  %v485_v27 = vpop.permute.xlu2 %484 }
 0x22a   :  { %v311_v29 = vpop.f32.mrf.mxu2 }
 0x22b   :  { %v312_v31 = vadd.f32 %v311_v29, %v271_v24 }
 0x22d   :  { %v317_v35 = vadd.f32 %v603_v14, %v312_v31 }
 0x22f   :  { %610 = vtanh.f32 %v317_v35 }
 0x230   :  { %612 = vtanh.f32 %v316_v34 }
 0x231   :  { %614 = vtanh.f32 %v315_v36 }
 0x232   :  { %616 = vtanh.f32 %v314_v37 }
 0x235   :  { %v611_v38 = vpop.eup %610 }
 0x236   :  { %376 = vmatpush.msra.mxu3 %v611_v38  ;;  %v613_v39 = vpop.eup %612 }
 0x237   :  { %v615_v40 = vpop.eup %614 }
 0x238   :  { %377 = vmatpush.msra.mxu3 %v613_v39  ;;  %v617_v42 = vpop.eup %616 }
 0x23a   :  { %378 = vmatpush.msra.mxu3 %v615_v40 }
 0x23c   :  { %379 = vmatpush.msra.mxu3 %v617_v42 }
 0x23d   :  { %572 = vmatmul.msk.f32.vlgmr.msra.gmra.mxu3 %vm193_vm1, %v564_v41 }
 0x245   :  { %573 = vmatmul.msk.f32.gmra.mxu3 %vm193_vm1, %v565_v43 }
 0x24d   :  { %574 = vmatmul.msk.f32.gmra.mxu3 %vm193_vm1, %v566_v44 }
 0x255   :  { %575 = vmatmul.msk.f32.gmra.mxu3 %vm193_vm1, %v567_v45 }
 0x2c0   :  { %v381_v46 = vpop.f32.mrf.mxu3 }
 0x2c1   :  { %v382_v57 = vadd.f32 %v381_v46, %v335_v56 }
 0x2c3   :  { %v393_v61 = vadd.f32 %v617_v42, %v382_v57 }
 0x2c8   :  { %v384_v47 = vpop.f32.mrf.mxu3 }
 0x2c9   :  { %v385_v54 = vadd.f32 %v384_v47, %v340_v52 }
 0x2cb   :  { %v394_v60 = vadd.f32 %v615_v40, %v385_v54 }
 0x2d0   :  { %v387_v49 = vpop.f32.mrf.mxu3 }
 0x2d1   :  { %v388_v51 = vadd.f32 %v387_v49, %v345_v50 }
 0x2d3   :  { %v395_v58 = vadd.f32 %v613_v39, %v388_v51 }
 0x2d8   :  { %v390_v53 = vpop.f32.mrf.mxu3 }
 0x2d9   :  { %v391_v55 = vadd.f32 %v390_v53, %v350_v48 }
 0x2db   :  { %v396_v59 = vadd.f32 %v611_v38, %v391_v55 }
 0x2dd   :  { %618 = vtanh.f32 %v396_v59 }
 0x2de   :  { %620 = vtanh.f32 %v395_v58 }
 0x2df   :  { %622 = vtanh.f32 %v394_v60 }
 0x2e0   :  { %624 = vtanh.f32 %v393_v61 }
 0x2e3   :  { %v619_v62 = vpop.eup %618 }
 0x2e4   :  { %455 = vmatpush.msrb.mxu1 %v619_v62  ;;  %v621_v63 = vpop.eup %620 }
 0x2e5   :  { %v623_v0 = vpop.eup %622 }
 0x2e6   :  { %456 = vmatpush.msrb.mxu1 %v621_v63  ;;  %v625_v2 = vpop.eup %624 }
 0x2e8   :  { %457 = vmatpush.msrb.mxu1 %v623_v0 }
 0x2ea   :  { %458 = vmatpush.msrb.mxu1 %v625_v2 }
 0x2eb   :  { %584 = vmatmul.msk.f32.vlgmr.msrb.gmra.mxu1 %vm193_vm1, %v576_v1 }
 0x2f3   :  { %585 = vmatmul.msk.f32.gmra.mxu1 %vm193_vm1, %v577_v3 }
 0x2fb   :  { %586 = vmatmul.msk.f32.gmra.mxu1 %vm193_vm1, %v578_v4 }
 0x303   :  { %587 = vmatmul.msk.f32.gmra.mxu1 %vm193_vm1, %v579_v5 }
 0x368   :  { %v460_v6 = vpop.f32.mrf.mxu1 }
 0x369   :  { %v461_v17 = vadd.f32 %v460_v6, %v414_v16 }
 0x36b   :  { %v472_v21 = vadd.f32 %v625_v2, %v461_v17 }
 0x370   :  { %v463_v7 = vpop.f32.mrf.mxu1 }
 0x371   :  { %v464_v14 = vadd.f32 %v463_v7, %v419_v12 }
 0x373   :  { %v473_v20 = vadd.f32 %v623_v0, %v464_v14 }
 0x378   :  { %v466_v9 = vpop.f32.mrf.mxu1 }
 0x379   :  { %v467_v11 = vadd.f32 %v466_v9, %v424_v10 }
 0x37b   :  { %v474_v18 = vadd.f32 %v621_v63, %v467_v11 }
 0x380   :  { %v469_v13 = vpop.f32.mrf.mxu1 }
 0x381   :  { %v470_v15 = vadd.f32 %v469_v13, %v429_v8 }
 0x383   :  { %v475_v19 = vadd.f32 %v619_v62, %v470_v15 }
 0x385   :  { %626 = vtanh.f32 %v475_v19 }
 0x386   :  { %628 = vtanh.f32 %v474_v18 }
 0x387   :  { %630 = vtanh.f32 %v473_v20 }
 0x388   :  { %632 = vtanh.f32 %v472_v21 }
 0x38b   :  { %v627_v22 = vpop.eup %626 }
 0x38c   :  { %502 = vmatpush.msrb.mxu2 %v627_v22  ;;  %v629_v23 = vpop.eup %628 }
 0x38d   :  { %v631_v24 = vpop.eup %630 }
 0x38e   :  { %503 = vmatpush.msrb.mxu2 %v629_v23  ;;  %v633_v26 = vpop.eup %632 }
 0x390   :  { %504 = vmatpush.msrb.mxu2 %v631_v24 }
 0x392   :  { %505 = vmatpush.msrb.mxu2 %v633_v26 }
 0x393   :  { %588 = vmatmul.msk.f32.vlgmr.msrb.gmra.mxu2 %vm193_vm1, %v480_v25 }
 0x416   :  { %v507_v28 = vpop.f32.mrf.mxu2 }
 0x417   :  { %v508_v29 = vadd.f32 %v507_v28, %v485_v27 }
 0x419   :  { %634 = vtanh.f32 %v508_v29 }
 0x41f   :  { %v635_v30 = vpop.eup %634 }
 0x420   :  { %511 = vst [vmem:[#allocation2] sm:$0xff] %v635_v30 }
 0x421   :  { %522 = dma.vmem_to_hbm [thread:$0]  %s518_s15, 128, %s520_s6, [#allocation3]  }
 0x422   :  { %660 = dma.done.wait [#allocation3], 128  }
 0x423   :  { %661 = vsyncadd [#allocation3], 4294967168 }
 0x424   :  { %527 = vsyncpa [#allocation3], 1 }

</bundles_post_ra>
